<compile_context>
chip_gen: v5e
topology: v5e:2x2
jax: 0.10.0
libtpu: 0.0.40
codegen_flags: <defaults>
</compile_context>

<pallas_src>
import functools
import math

import jax
import jax.numpy as jnp
from jax import lax
from jax.experimental import pallas as pl
from jax.experimental.pallas import tpu as pltpu


def _round_up(x, m):
    return ((x + m - 1) // m) * m


def _supcon_kernel(rowp_ref, anchor_ref, featT_ref, colp_ref, out_ref, *,
                   temperature, base_temperature, tm, n_real):
    i = pl.program_id(0)
    inv_t = jnp.float32(1.0 / temperature)
    neg_big = jnp.float32(-1e9)          # exp() underflows to 0; far from f32 overflow

    a = anchor_ref[...]                  # [TM, D_pad]    (bf16, streamed)
    ft = featT_ref[...]                  # [D_pad, N_col] (bf16, resident, single buffer)
    n_col = ft.shape[1]

    # cos_theta tile on the MXU: native [M,K] @ [K,N], f32 accumulation.
    cos_theta = jnp.dot(a, ft, preferred_element_type=jnp.float32)      # [TM, N_col]
    cos_theta = jnp.clip(cos_theta, -1.0, 1.0)

    # Validity / diagonal masks (n_real is static).
    row_ids = lax.broadcasted_iota(jnp.int32, (tm, 1), 0) + i * tm       # global row ids
    col_ids = lax.broadcasted_iota(jnp.int32, (1, n_col), 1)
    col_valid = col_ids < n_real                                          # [1, N_col]
    logits_mask = jnp.logical_and(col_valid, row_ids != col_ids)          # [TM, N_col]

    # Row max of the numerator logits over valid columns; 1/T > 0 commutes with max,
    # so scale the [TM,1] result instead of the full [TM,N] slab.
    logits_max = inv_t * jnp.max(jnp.where(col_valid, cos_theta, neg_big),
                                 axis=1, keepdims=True)                   # [TM, 1]

    # Label-derived quantities: O(N) data, trig hoisted to the wrapper.
    rp = rowp_ref[...]                                                    # [TM, 3]
    cp = colp_ref[...]                                                    # [3, N_col]
    l_row, ca_row, sa_row = rp[:, 0:1], rp[:, 1:2], rp[:, 2:3]
    l_col, ca_col, sa_col = cp[0:1, :], cp[1:2, :], cp[2:3, :]

    # Positive-pair reductions first so pos_mask's slab dies before neg_logit is built.
    pos_mask = jnp.logical_and(l_row == l_col, logits_mask).astype(jnp.float32)
    s_ct = jnp.sum(pos_mask * cos_theta, axis=1, keepdims=True)           # [TM, 1]
    s_m = jnp.sum(pos_mask, axis=1, keepdims=True)                        # [TM, 1]

    # phi = pi - pi*(l_i - l_j)/max  =>  cos_phi = -cos(a_i - a_j), |sin_phi| = |sin(a_i - a_j)|
    cos_phi = -(ca_row * ca_col + sa_row * sa_col)                        # [TM, N_col]
    abs_sin_phi = jnp.abs(sa_row * ca_col - ca_row * sa_col)              # [TM, N_col]
    sin_theta = jnp.sqrt(1.0 - cos_theta * cos_theta + 1e-5)

    # Denominator over non-diagonal valid columns, as a stabilized log-sum-exp
    # (mathematically identical to the reference's unshifted sum of exp).
    neg_logit = jnp.where(
        logits_mask, (cos_theta * cos_phi - sin_theta * abs_sin_phi) * inv_t, neg_big)
    neg_max = jnp.max(neg_logit, axis=1, keepdims=True)                   # [TM, 1]
    denom = jnp.sum(jnp.exp(neg_logit - neg_max), axis=1, keepdims=True)
    log_denom = neg_max + jnp.log(denom)

    # Fused log-prob reduction; exact divide (it only touches a [TM,1] vector).
    sum_mask_logprob = s_ct * inv_t - (logits_max + log_denom) * s_m
    mean_log_prob_pos = (sum_mask_logprob + 1e-5) / (s_m + 1e-5)

    scale = jnp.float32(-(temperature / base_temperature))
    row_valid = row_ids < n_real
    loss_rows = jnp.where(row_valid, scale * mean_log_prob_pos, 0.0)      # [TM, 1]
    partial = jnp.sum(loss_rows)

    # Lane-dense per-tile output block; the wrapper reads one scalar per block.
    out_ref[...] = jnp.zeros((8, 128), jnp.float32) + partial


def _resident_block_spec(shape):
    """Constant-index resident block; single-buffered when the API supports it."""
    try:
        return pl.BlockSpec(shape, lambda i: (0, 0), pipeline_mode=pl.Buffered(1))
    except Exception:  # older/newer API without pipeline_mode — plain (double-buffered) spec
        return pl.BlockSpec(shape, lambda i: (0, 0))


def _vmem_capacity_bytes():
    try:
        return int(pltpu.get_tpu_info().vmem_capacity_bytes)
    except Exception:
        return 64 * 1024 * 1024      # v7x per-TensorCore — safe floor for all generations


def supcon_loss_comp(features, labels, *, max_internal=100.0,
                     temperature=1.0, base_temperature=1.0,
                     row_tile=512, mxu_dtype=jnp.bfloat16):
    """features: [bsz, n_views, ...] (L2-normalized views), labels: [bsz] or [bsz, 1]."""
    bsz, n_views = features.shape[0], features.shape[1]
    feats = features.reshape(bsz, n_views, -1).astype(jnp.float32)
    d = feats.shape[-1]
    n = bsz * n_views

    # contrast_feature = torch.cat(torch.unbind(features, dim=1), dim=0)  (view-major rows)
    contrast = jnp.transpose(feats, (1, 0, 2)).reshape(n, d)

    # Length-N label vector (view-major) + hoisted trig: O(N) transcendentals total.
    labels_flat = labels.reshape(-1).astype(jnp.float32)                  # [bsz]
    l = jnp.tile(labels_flat, n_views)                                    # [N]
    ang = jnp.float32(math.pi / float(max_internal)) * l
    ca, sa = jnp.cos(ang), jnp.sin(ang)

    # Lane/MXU-aligned padding: columns -> x256, feature dim -> x128.
    d_pad = _round_up(d, 128)
    n_col_pad = _round_up(n, 256)

    # ---- generation-aware VMEM budget -> row tile size --------------------------------
    vmem_cap = _vmem_capacity_bytes()
    vmem_limit = (vmem_cap * 7) // 8                       # ~56 MiB on v7x, ~112 MiB on v5e/v6e
    dt_bytes = jnp.dtype(mxu_dtype).itemsize
    resident = d_pad * n_col_pad * dt_bytes + 8 * n_col_pad * 4   # contrast^T + colp (x1 buffer)
    fixed = resident + 2 * 8 * 128 * 4 + 4 * 1024 * 1024          # out dbuf + compiler scratch margin
    n_slabs = 5                                                   # peak live [TM, N_col] f32 temporaries
    per_row = n_slabs * 4 * n_col_pad + 2 * d_pad * dt_bytes + 2 * 128 * 4
    tm_cap = max(16, (vmem_limit - fixed) // per_row)

    tm = int(max(16, min(int(row_tile), tm_cap, _round_up(n, 16))))
    tm = (tm // 16) * 16
    if tm >= 128:
        tm = (tm // 128) * 128
    if tm >= n and n >= 256:
        # keep >=2 row tiles so both v7x TensorCores get work under the "parallel" axis
        tm = _round_up((n + 1) // 2, 128)
    n_row_pad = _round_up(n, tm)
    num_tiles = n_row_pad // tm

    # ---- padded / transposed operands (one-time XLA work, amortized over the grid) ----
    anchor_p = jnp.pad(contrast, ((0, n_row_pad - n), (0, d_pad - d))).astype(mxu_dtype)
    feat_T = jnp.pad(contrast, ((0, n_col_pad - n), (0, d_pad - d))).T.astype(mxu_dtype)

    l_r = jnp.pad(l, (0, n_row_pad - n))
    ca_r = jnp.pad(ca, (0, n_row_pad - n))
    sa_r = jnp.pad(sa, (0, n_row_pad - n))
    l_c = jnp.pad(l, (0, n_col_pad - n))
    ca_c = jnp.pad(ca, (0, n_col_pad - n))
    sa_c = jnp.pad(sa, (0, n_col_pad - n))
    rowp = jnp.stack([l_r, ca_r, sa_r], axis=1)            # [N_row_pad, 3]
    colp = jnp.stack([l_c, ca_c, sa_c], axis=0)            # [3, N_col_pad]

    kernel = functools.partial(
        _supcon_kernel,
        temperature=float(temperature),
        base_temperature=float(base_temperature),
        tm=tm, n_real=n)

    out = pl.pallas_call(
        kernel,
        out_shape=jax.ShapeDtypeStruct((num_tiles * 8, 128), jnp.float32),
        grid=(num_tiles,),
        in_specs=[
            pl.BlockSpec((tm, 3), lambda i: (i, 0)),          # row label params (streamed)
            pl.BlockSpec((tm, d_pad), lambda i: (i, 0)),      # anchor row tile (streamed, bf16)
            _resident_block_spec((d_pad, n_col_pad)),         # contrast^T (resident, single buffer)
            _resident_block_spec((3, n_col_pad)),             # column label params (resident)
        ],
        out_specs=pl.BlockSpec((8, 128), lambda i: (i, 0)),
        compiler_params=pltpu.CompilerParams(
            dimension_semantics=("parallel",),
            vmem_limit_bytes=int(vmem_limit),
        ),
    )(rowp, anchor_p, feat_T, colp)

    partials = out[0::8, 0]                                   # one scalar per row tile
    # loss.view(anchor_count, batch_size).mean() == mean over all N rows
    return jnp.sum(partials) / jnp.float32(n)


def supcon_loss_comp_ref(features, labels, *, max_internal=100.0,
                         temperature=1.0, base_temperature=1.0):
    """Pure-JAX mirror of the PyTorch forward, for validation."""
    bsz = features.shape[0]
    n_views = features.shape[1]
    feats = features.reshape(bsz, n_views, -1).astype(jnp.float32)
    n = bsz * n_views
    contrast = jnp.transpose(feats, (1, 0, 2)).reshape(n, feats.shape[-1])
    labels = labels.reshape(bsz, 1).astype(jnp.float32)
    dist = jnp.tile(labels - labels.T, (n_views, n_views))
    mask = jnp.tile((labels == labels.T).astype(jnp.float32), (n_views, n_views))
    phi = (1.0 - dist / max_internal) * jnp.pi
    cos_phi, sin_phi = jnp.cos(phi), jnp.sin(phi)
    cos_theta = jnp.clip(contrast @ contrast.T, -1.0, 1.0)
    sin_theta = jnp.sqrt(1.0 - cos_theta ** 2 + 1e-5)
    logits = cos_theta / temperature
    logits = logits - jnp.max(logits, axis=1, keepdims=True)
    logits_mask = 1.0 - jnp.eye(n, dtype=jnp.float32)
    mask = mask * logits_mask
    neg_logit = (cos_theta * cos_phi - sin_theta * jnp.abs(sin_phi)) / temperature
    exp_logits = jnp.exp(neg_logit) * logits_mask
    log_prob = logits - jnp.log(jnp.sum(exp_logits, axis=1, keepdims=True))
    mean_log_prob_pos = (jnp.sum(mask * log_prob, axis=1) + 1e-5) / \
                        (jnp.sum(mask, axis=1) + 1e-5)
    loss = -(temperature / base_temperature) * mean_log_prob_pos
    return jnp.mean(loss.reshape(n_views, bsz))


if __name__ == "__main__":
    key = jax.random.PRNGKey(0)
    kf, kl = jax.random.split(key)

    # Case 1: bsz=8, n_views=2, d=32  (N=16, single row tile, cols padded to 256, D to 128)
    bsz, n_views, d = 8, 2, 32
    features = jax.random.normal(kf, (bsz, n_views, d), dtype=jnp.float32)
    features = features / jnp.linalg.norm(features, axis=-1, keepdims=True)
    labels = jax.random.randint(kl, (bsz, 1), 0, 3).astype(jnp.float32)

    loss = jax.block_until_ready(supcon_loss_comp(features, labels))
    ref = supcon_loss_comp_ref(features, labels)
    assert jnp.isfinite(loss), loss
    # bf16 MXU operands (f32 accumulation) -> ~1e-3-level deviation on cos_theta.
    assert jnp.allclose(loss, ref, rtol=1e-2, atol=1e-2), (loss, ref)

    # Case 2: exercises multi-tile grid + row/col padding (N=20, TM=16 -> 2 row tiles)
    kf2, kl2 = jax.random.split(jax.random.PRNGKey(1))
    bsz2, nv2, d2 = 10, 2, 64
    f2 = jax.random.normal(kf2, (bsz2, nv2, d2), dtype=jnp.float32)
    f2 = f2 / jnp.linalg.norm(f2, axis=-1, keepdims=True)
    lab2 = jax.random.randint(kl2, (bsz2, 1), 0, 4).astype(jnp.float32)

    loss2 = jax.block_until_ready(supcon_loss_comp(f2, lab2, row_tile=16))
    ref2 = supcon_loss_comp_ref(f2, lab2)
    assert jnp.isfinite(loss2), loss2
    assert jnp.allclose(loss2, ref2, rtol=1e-2, atol=1e-2), (loss2, ref2)

    print("KERNEL_OK")
</pallas_src>

<mosaic_0001>
module attributes {stable_mosaic.version = 11 : i64} {
  func.func @_supcon_kernel(%arg0: i32, %arg1: memref<16x3xf32, #tpu.memory_space<vmem>>, %arg2: memref<16x128xbf16, #tpu.memory_space<vmem>>, %arg3: memref<128x256xbf16, #tpu.memory_space<vmem>>, %arg4: memref<3x256xf32, #tpu.memory_space<vmem>>, %arg5: memref<8x128xf32, #tpu.memory_space<vmem>>) attributes {dimension_semantics = [#tpu.dimension_semantics<parallel>], iteration_bounds = array<i64: 1>, scalar_prefetch = 0 : i64, scratch_operands = 0 : i64, tpu.core_type = #tpu.core_type<tc>, window_params = [{transform_indices = @transform_0, window_bounds = array<i64: 16, 3>}, {transform_indices = @transform_1, window_bounds = array<i64: 16, 128>}, {pipeline_mode = #tpu.pipeline_mode<synchronous>, transform_indices = @transform_2, window_bounds = array<i64: 128, 256>}, {pipeline_mode = #tpu.pipeline_mode<synchronous>, transform_indices = @transform_3, window_bounds = array<i64: 3, 256>}, {transform_indices = @transform_4, window_bounds = array<i64: 8, 128>}]} {
    %c0 = arith.constant 0 : index
    %c0_0 = arith.constant 0 : index
    %0 = vector.load %arg2[%c0, %c0_0] : memref<16x128xbf16, #tpu.memory_space<vmem>>, vector<16x128xbf16>
    %c0_1 = arith.constant 0 : index
    %c0_2 = arith.constant 0 : index
    %1 = vector.load %arg3[%c0_1, %c0_2] : memref<128x256xbf16, #tpu.memory_space<vmem>>, vector<128x256xbf16>
    %cst = arith.constant dense<0.000000e+00> : vector<16x256xf32>
    %2 = tpu.matmul %0, %1, %cst {dimension_numbers = #tpu.dot_dimension_numbers<[1], [0], [0], [1], [0, 0, 1, 1], [], []>} : vector<16x128xbf16>, vector<128x256xbf16>, vector<16x256xf32> -> vector<16x256xf32>
    %cst_3 = arith.constant -1.000000e+00 : f32
    %cst_4 = arith.constant 1.000000e+00 : f32
    %3 = vector.broadcast %cst_3 : f32 to vector<16x256xf32>
    %4 = arith.maximumf %3, %2 : vector<16x256xf32>
    %5 = vector.broadcast %cst_4 : f32 to vector<16x256xf32>
    %6 = arith.minimumf %5, %4 : vector<16x256xf32>
    %7 = tpu.iota {dimensions = array<i32: 0>} : vector<16x1xi32>
    %c16_i32 = arith.constant 16 : i32
    %8 = arith.muli %arg0, %c16_i32 : i32
    %9 = vector.broadcast %8 : i32 to vector<16x1xi32>
    %10 = arith.addi %7, %9 : vector<16x1xi32>
    %11 = tpu.iota {dimensions = array<i32: 1>} : vector<1x256xi32>
    %c16_i32_5 = arith.constant 16 : i32
    %12 = vector.broadcast %c16_i32_5 : i32 to vector<1x256xi32>
    %13 = arith.cmpi slt, %11, %12 : vector<1x256xi32>
    %14 = vector.broadcast %10 : vector<16x1xi32> to vector<16x256xi32>
    %15 = vector.broadcast %11 : vector<1x256xi32> to vector<16x256xi32>
    %16 = arith.cmpi ne, %14, %15 : vector<16x256xi32>
    %17 = vector.broadcast %13 : vector<1x256xi1> to vector<16x256xi1>
    %18 = arith.andi %17, %16 : vector<16x256xi1>
    %cst_6 = arith.constant -1.000000e+09 : f32
    %19 = vector.shape_cast %13 : vector<1x256xi1> to vector<1x256xi1>
    %20 = vector.broadcast %19 : vector<1x256xi1> to vector<16x256xi1>
    %21 = vector.broadcast %cst_6 : f32 to vector<16x256xf32>
    %22 = arith.select %20, %6, %21 : vector<16x256xi1>, vector<16x256xf32>
    %cst_7 = arith.constant dense<0xFF800000> : vector<16xf32>
    %23 = vector.multi_reduction <maximumf>, %22, %cst_7 [1] : vector<16x256xf32> to vector<16xf32>
    %24 = vector.shape_cast %23 : vector<16xf32> to vector<16x1xf32>
    %cst_8 = arith.constant 1.000000e+00 : f32
    %25 = vector.broadcast %cst_8 : f32 to vector<16x1xf32>
    %26 = arith.mulf %25, %24 : vector<16x1xf32>
    %c0_9 = arith.constant 0 : index
    %c0_10 = arith.constant 0 : index
    %27 = vector.load %arg1[%c0_9, %c0_10] : memref<16x3xf32, #tpu.memory_space<vmem>>, vector<16x3xf32>
    %c0_11 = arith.constant 0 : index
    %c0_12 = arith.constant 0 : index
    %28 = vector.load %arg4[%c0_11, %c0_12] : memref<3x256xf32, #tpu.memory_space<vmem>>, vector<3x256xf32>
    %29 = vector.extract_strided_slice %27 {offsets = [0, 0], sizes = [16, 1], strides = [1, 1]} : vector<16x3xf32> to vector<16x1xf32>
    %30 = vector.extract_strided_slice %27 {offsets = [0, 1], sizes = [16, 1], strides = [1, 1]} : vector<16x3xf32> to vector<16x1xf32>
    %31 = vector.extract_strided_slice %27 {offsets = [0, 2], sizes = [16, 1], strides = [1, 1]} : vector<16x3xf32> to vector<16x1xf32>
    %32 = vector.extract_strided_slice %28 {offsets = [0, 0], sizes = [1, 256], strides = [1, 1]} : vector<3x256xf32> to vector<1x256xf32>
    %33 = vector.extract_strided_slice %28 {offsets = [1, 0], sizes = [1, 256], strides = [1, 1]} : vector<3x256xf32> to vector<1x256xf32>
    %34 = vector.extract_strided_slice %28 {offsets = [2, 0], sizes = [1, 256], strides = [1, 1]} : vector<3x256xf32> to vector<1x256xf32>
    %35 = vector.broadcast %29 : vector<16x1xf32> to vector<16x256xf32>
    %36 = vector.broadcast %32 : vector<1x256xf32> to vector<16x256xf32>
    %37 = arith.cmpf oeq, %35, %36 : vector<16x256xf32>
    %38 = arith.andi %37, %18 : vector<16x256xi1>
    %39 = arith.extui %38 : vector<16x256xi1> to vector<16x256xi32>
    %40 = arith.sitofp %39 : vector<16x256xi32> to vector<16x256xf32>
    %41 = arith.mulf %40, %6 : vector<16x256xf32>
    %cst_13 = arith.constant dense<0.000000e+00> : vector<16xf32>
    %42 = vector.multi_reduction <add>, %41, %cst_13 [1] : vector<16x256xf32> to vector<16xf32>
    %43 = vector.shape_cast %42 : vector<16xf32> to vector<16x1xf32>
    %cst_14 = arith.constant dense<0.000000e+00> : vector<16xf32>
    %44 = vector.multi_reduction <add>, %40, %cst_14 [1] : vector<16x256xf32> to vector<16xf32>
    %45 = vector.shape_cast %44 : vector<16xf32> to vector<16x1xf32>
    %46 = vector.broadcast %30 : vector<16x1xf32> to vector<16x256xf32>
    %47 = vector.broadcast %33 : vector<1x256xf32> to vector<16x256xf32>
    %48 = arith.mulf %46, %47 : vector<16x256xf32>
    %49 = vector.broadcast %31 : vector<16x1xf32> to vector<16x256xf32>
    %50 = vector.broadcast %34 : vector<1x256xf32> to vector<16x256xf32>
    %51 = arith.mulf %49, %50 : vector<16x256xf32>
    %52 = arith.addf %48, %51 : vector<16x256xf32>
    %cst_15 = arith.constant 0.000000e+00 : f32
    %53 = vector.broadcast %cst_15 : f32 to vector<16x256xf32>
    %54 = arith.subf %53, %52 : vector<16x256xf32>
    %55 = vector.broadcast %31 : vector<16x1xf32> to vector<16x256xf32>
    %56 = vector.broadcast %33 : vector<1x256xf32> to vector<16x256xf32>
    %57 = arith.mulf %55, %56 : vector<16x256xf32>
    %58 = vector.broadcast %30 : vector<16x1xf32> to vector<16x256xf32>
    %59 = vector.broadcast %34 : vector<1x256xf32> to vector<16x256xf32>
    %60 = arith.mulf %58, %59 : vector<16x256xf32>
    %61 = arith.subf %57, %60 : vector<16x256xf32>
    %62 = math.absf %61 : vector<16x256xf32>
    %63 = arith.mulf %6, %6 : vector<16x256xf32>
    %cst_16 = arith.constant 1.000000e+00 : f32
    %64 = vector.broadcast %cst_16 : f32 to vector<16x256xf32>
    %65 = arith.subf %64, %63 : vector<16x256xf32>
    %cst_17 = arith.constant 9.99999974E-6 : f32
    %66 = vector.broadcast %cst_17 : f32 to vector<16x256xf32>
    %67 = arith.addf %65, %66 : vector<16x256xf32>
    %68 = math.sqrt %67 : vector<16x256xf32>
    %69 = arith.mulf %6, %54 : vector<16x256xf32>
    %70 = arith.mulf %68, %62 : vector<16x256xf32>
    %71 = arith.subf %69, %70 : vector<16x256xf32>
    %cst_18 = arith.constant 1.000000e+00 : f32
    %72 = vector.broadcast %cst_18 : f32 to vector<16x256xf32>
    %73 = arith.mulf %71, %72 : vector<16x256xf32>
    %cst_19 = arith.constant -1.000000e+09 : f32
    %74 = vector.broadcast %cst_19 : f32 to vector<16x256xf32>
    %75 = arith.select %18, %73, %74 : vector<16x256xi1>, vector<16x256xf32>
    %cst_20 = arith.constant dense<0xFF800000> : vector<16xf32>
    %76 = vector.multi_reduction <maximumf>, %75, %cst_20 [1] : vector<16x256xf32> to vector<16xf32>
    %77 = vector.shape_cast %76 : vector<16xf32> to vector<16x1xf32>
    %78 = vector.broadcast %77 : vector<16x1xf32> to vector<16x256xf32>
    %79 = arith.subf %75, %78 : vector<16x256xf32>
    %80 = math.exp %79 : vector<16x256xf32>
    %cst_21 = arith.constant dense<0.000000e+00> : vector<16xf32>
    %81 = vector.multi_reduction <add>, %80, %cst_21 [1] : vector<16x256xf32> to vector<16xf32>
    %82 = vector.shape_cast %81 : vector<16xf32> to vector<16x1xf32>
    %83 = math.log %82 : vector<16x1xf32>
    %84 = arith.addf %77, %83 : vector<16x1xf32>
    %cst_22 = arith.constant 1.000000e+00 : f32
    %85 = vector.broadcast %cst_22 : f32 to vector<16x1xf32>
    %86 = arith.mulf %43, %85 : vector<16x1xf32>
    %87 = arith.addf %26, %84 : vector<16x1xf32>
    %88 = arith.mulf %87, %45 : vector<16x1xf32>
    %89 = arith.subf %86, %88 : vector<16x1xf32>
    %cst_23 = arith.constant 9.99999974E-6 : f32
    %90 = vector.broadcast %cst_23 : f32 to vector<16x1xf32>
    %91 = arith.addf %89, %90 : vector<16x1xf32>
    %cst_24 = arith.constant 9.99999974E-6 : f32
    %92 = vector.broadcast %cst_24 : f32 to vector<16x1xf32>
    %93 = arith.addf %45, %92 : vector<16x1xf32>
    %94 = arith.divf %91, %93 : vector<16x1xf32>
    %c16_i32_25 = arith.constant 16 : i32
    %95 = vector.broadcast %c16_i32_25 : i32 to vector<16x1xi32>
    %96 = arith.cmpi slt, %10, %95 : vector<16x1xi32>
    %cst_26 = arith.constant -1.000000e+00 : f32
    %97 = vector.broadcast %cst_26 : f32 to vector<16x1xf32>
    %98 = arith.mulf %97, %94 : vector<16x1xf32>
    %cst_27 = arith.constant 0.000000e+00 : f32
    %99 = vector.broadcast %cst_27 : f32 to vector<16x1xf32>
    %100 = arith.select %96, %98, %99 : vector<16x1xi1>, vector<16x1xf32>
    %101 = vector.shape_cast %100 : vector<16x1xf32> to vector<1x16x1xf32>
    %cst_28 = arith.constant dense<0.000000e+00> : vector<1xf32>
    %102 = vector.multi_reduction <add>, %101, %cst_28 [1, 2] : vector<1x16x1xf32> to vector<1xf32>
    %103 = vector.shape_cast %102 : vector<1xf32> to vector<1x1x1xf32>
    %104 = vector.extract %103[0, 0, 0] : f32 from vector<1x1x1xf32>
    %cst_29 = arith.constant 0.000000e+00 : f32
    %105 = vector.broadcast %cst_29 : f32 to vector<8x128xf32>
    %106 = vector.broadcast %104 : f32 to vector<8x128xf32>
    %107 = arith.addf %105, %106 : vector<8x128xf32>
    %c0_30 = arith.constant 0 : index
    %c0_31 = arith.constant 0 : index
    %108 = vector.load %arg5[%c0_30, %c0_31] : memref<8x128xf32, #tpu.memory_space<vmem>>, vector<8x128xf32>
    tpu.vector_store %arg5[%c0_30, %c0_31], %107 {strides = array<i32>} : memref<8x128xf32, #tpu.memory_space<vmem>>, vector<8x128xf32>,
    return
  }
  func.func @transform_0(%arg0: i32) -> (i32, i32) {
    %c0_i32 = arith.constant 0 : i32
    %c0_i32_0 = arith.constant 0 : i32
    return %arg0, %c0_i32 : i32, i32
  }
  func.func @transform_1(%arg0: i32) -> (i32, i32) {
    %c0_i32 = arith.constant 0 : i32
    %c0_i32_0 = arith.constant 0 : i32
    return %arg0, %c0_i32 : i32, i32
  }
  func.func @transform_2(%arg0: i32) -> (i32, i32) {
    %c0_i32 = arith.constant 0 : i32
    %c0_i32_0 = arith.constant 0 : i32
    %c0_i32_1 = arith.constant 0 : i32
    return %c0_i32, %c0_i32_0 : i32, i32
  }
  func.func @transform_3(%arg0: i32) -> (i32, i32) {
    %c0_i32 = arith.constant 0 : i32
    %c0_i32_0 = arith.constant 0 : i32
    %c0_i32_1 = arith.constant 0 : i32
    return %c0_i32, %c0_i32_0 : i32, i32
  }
  func.func @transform_4(%arg0: i32) -> (i32, i32) {
    %c0_i32 = arith.constant 0 : i32
    %c0_i32_0 = arith.constant 0 : i32
    return %arg0, %c0_i32 : i32, i32
  }
}

</mosaic_0001>

<bundles_post_ra>
// kernel: tpu_custom_call.1
= control target key start
LH: loop header
LB: loop body
LE: loop exit
PB: predicated region body
PF: predicated region fallthrough
CT: control target
= control target key end

     0   :  { %9 = vsyncpa [#allocation3], 0  ;;  %s784_s0 = inlined_call_operand.vmem [shape: f32[16,3], index: 0, kind: input, shape index: {}]   ;;  %s785_s1 = inlined_call_operand.vmem [shape: bf16[16,128], index: 1, kind: input, shape index: {}]   ;;  %s786_s2 = inlined_call_operand.hbm [shape: bf16[128,256], index: 2, kind: input, shape index: {}]   ;;  %s787_s3 = inlined_call_operand.vmem [shape: f32[3,256], index: 3, kind: input, shape index: {}]   ;;  %s788_s4 = inlined_call_operand.hbm [shape: f32[8,128], index: 4, kind: output, shape index: {}]  }
   0x1   :  { %10 = vsyncpa [#allocation4], 0  ;;  %s19_s17 = sshll.u32 %s786_s2, 4  ;;  %s683_s18 = smov [#allocation2]   ;;  %s20_s17 = int_to_ptr.hbm [resolvable:$true] %s19_s17 }
   0x2   :  { %s21_s19 = sshll.u32 %s683_s18, 4  ;;  %s684_s20 = smov 128   ;;  %s22_s19 = int_to_ptr.vmem [resolvable:$true] %s21_s19 }
   0x3   :  { %s685_s21 = smov 8  }
   0x4   :  { %27 = dma.hbm_to_vmem [thread:$0]  %s20_s17, 2048, %s22_s19, [#allocation3], %s684_s20, %s684_s20, %s685_s21  }
   0x5   :  { %679 = dma.done.wait [#allocation3], 2048  }
   0x6   :  { %680 = vsyncadd [#allocation3], 4294965248  ;;  %v686_v0 = vmov 1   ;;  %v567_v1 = vld [vmem:[#allocation2 + $0x70] sm:$0xf]  ;;  %v208_v21 = vld [vmem:[%s784_s0] sm:$0xff]  ;;  %v174_v56 = vlaneseq }
   0x7   :  { %606 = vset.pattern.permute.xlu0 %v686_v0  ;;  %v595_v2 = vld [vmem:[#allocation2 + $0x74] sm:$0xf0]  ;;  %v594_v3 = vld [vmem:[#allocation2 + $0x74] sm:$0xf]  ;;  %v569_v5 = vld [vmem:[#allocation2 + $0x78] sm:$0xf0] }
   0x8   :  { %v568_v4 = vor.u32 %v595_v2, %v567_v1  ;;  %v559_v6 = vld [vmem:[#allocation2 + $0x60] sm:$0xf]  ;;  %v593_v7 = vld [vmem:[#allocation2 + $0x64] sm:$0xf0]  ;;  %v572_v8 = vor.u32 %v594_v3, %v569_v5  ;;  %v592_v9 = vld [vmem:[#allocation2 + $0x64] sm:$0xf]  ;;  %261 = vperm.xlu0 %606, %v208_v21  }
   0x9   :  { %v561_v10 = vld [vmem:[#allocation2 + $0x68] sm:$0xf0]  ;;  %v560_v11 = vor.u32 %v593_v7, %v559_v6  ;;  %v551_v13 = vld [vmem:[#allocation2 + $0x50] sm:$0xf]  ;;  %v591_v14 = vld [vmem:[#allocation2 + $0x54] sm:$0xf0] }
   0xa   :  { %138 = vmatpush.bf16.msra.mxu0 %v568_v4  ;;  %152 = vmatpush.bf16.msra.mxu1 %v572_v8  ;;  %v564_v12 = vor.u32 %v592_v9, %v561_v10  ;;  %v590_v15 = vld [vmem:[#allocation2 + $0x54] sm:$0xf]  ;;  %v553_v16 = vld [vmem:[#allocation2 + $0x58] sm:$0xf0]  ;;  %v552_v17 = vor.u32 %v591_v14, %v551_v13  ;;  %v543_v19 = vld [vmem:[#allocation2 + $0x40] sm:$0xf] }
   0xb   :  { %v556_v18 = vor.u32 %v590_v15, %v553_v16  ;;  %v589_v20 = vld [vmem:[#allocation2 + $0x44] sm:$0xf0]  ;;  %v588_v22 = vld [vmem:[#allocation2 + $0x44] sm:$0xf]  ;;  %v545_v23 = vld [vmem:[#allocation2 + $0x48] sm:$0xf0] }
   0xc   :  { %v687_v24 = vmov 2   ;;  %v544_v25 = vor.u32 %v589_v20, %v543_v19  ;;  %v548_v26 = vor.u32 %v588_v22, %v545_v23  ;;  %v535_v27 = vld [vmem:[#allocation2 + $0x30] sm:$0xf]  ;;  %v587_v28 = vld [vmem:[#allocation2 + $0x34] sm:$0xf0]  ;;  %v209_v31 = vld [vmem:[%s784_s0 + $0x8] sm:$0xff] }
   0xd   :  { %607 = vset.pattern.permute.xlu1 %v687_v24  ;;  %v586_v29 = vld [vmem:[#allocation2 + $0x34] sm:$0xf]  ;;  %v537_v30 = vld [vmem:[#allocation2 + $0x38] sm:$0xf0]  ;;  %v536_v32 = vor.u32 %v587_v28, %v535_v27  ;;  %v527_v34 = vld [vmem:[#allocation2 + $0x20] sm:$0xf] }
   0xe   :  { %139 = vmatpush.bf16.msra.mxu0 %v560_v11  ;;  %153 = vmatpush.bf16.msra.mxu1 %v564_v12  ;;  %v540_v33 = vor.u32 %v586_v29, %v537_v30  ;;  %v585_v35 = vld [vmem:[#allocation2 + $0x24] sm:$0xf0]  ;;  %v584_v36 = vld [vmem:[#allocation2 + $0x24] sm:$0xf]  ;;  %v529_v37 = vld [vmem:[#allocation2 + $0x28] sm:$0xf0] }
   0xf   :  { %279 = vperm.xlu1 %607, %v208_v21   ;;  %v528_v38 = vor.u32 %v585_v35, %v527_v34  ;;  %v532_v39 = vor.u32 %v584_v36, %v529_v37  ;;  %v519_v40 = vld [vmem:[#allocation2 + $0x10] sm:$0xf]  ;;  %v583_v41 = vld [vmem:[#allocation2 + $0x14] sm:$0xf0]  ;;  %v582_v42 = vld [vmem:[#allocation2 + $0x14] sm:$0xf] }
  0x10   :  { %265 = vperm.xlu0 %606, %v209_v31   ;;  %v521_v43 = vld [vmem:[#allocation2 + $0x18] sm:$0xf0]  ;;  %v520_v44 = vor.u32 %v583_v41, %v519_v40  ;;  %v511_v46 = vld [vmem:[#allocation2] sm:$0xf]  ;;  %v581_v47 = vld [vmem:[#allocation2 + $0x4] sm:$0xf0] }
  0x11   :  { %v524_v45 = vor.u32 %v582_v42, %v521_v43  ;;  %v580_v48 = vld [vmem:[#allocation2 + $0x4] sm:$0xf]  ;;  %v513_v49 = vld [vmem:[#allocation2 + $0x8] sm:$0xf0]  ;;  %v688_v50 = vmov 0   ;;  %v512_v51 = vor.u32 %v581_v47, %v511_v46  ;;  %v175_v58 = vshrl.u32 %v174_v56, 7 }
  0x12   :  { %140 = vmatpush.bf16.msra.mxu0 %v552_v17  ;;  %154 = vmatpush.bf16.msra.mxu1 %v556_v18  ;;  %v516_v52 = vor.u32 %v580_v48, %v513_v49  ;;  %v579_v53 = vld [vmem:[%s785_s1] sm:$0xff]  ;;  %v182_v61 = vand.u32 127, %v174_v56  ;;  %v689_v5 = vmov 0.0   ;;  %s690_s1 = smov [#allocation5]   ;;  %s495_s30 = sshll.u32 %s788_s4, 4  ;;  %s496_s30 = int_to_ptr.hbm [resolvable:$true] %s495_s30 }
  0x13   :  { %v210_v59 = vld [vmem:[%s787_s3] sm:$0x77]  ;;  %v176_v63 = vadd.s32 8, %v175_v58  ;;  %s493_s3 = sshll.u32 %s690_s1, 4  ;;  %s494_s3 = int_to_ptr.vmem [resolvable:$true] %s493_s3 }
  0x14   :  { %v222_v62 = vperm.slane %v210_v59, 0  ;;  %vm184_vm0 = vcmp.lt.s32.totalorder %v182_v61, 16  ;;  %vm186_vm1 = vcmp.ne.s32.totalorder %v175_v58, %v182_v61  ;;  %v268_v15 = vperm.slane %v210_v59, 1 }
  0x15   :  { %vm188_vm2 = vcmp.ne.s32.totalorder %v176_v63, %v182_v61  ;;  %vm736_vm3 = vmand %vm184_vm0, %vm186_vm1  ;;  %v286_v17 = vperm.slane %v210_v59, 2 }
  0x16   :  { %141 = vmatpush.bf16.msra.mxu0 %v544_v25  ;;  %155 = vmatpush.bf16.msra.mxu1 %v548_v26  ;;  %v226_v0 = vperm.slane %v222_v62, 0  ;;  %vm741_vm4 = vmand %vm184_vm0, %vm188_vm2  ;;  %v272_v22 = vperm.slane %v268_v15, 1 }
  0x17   :  { %283 = vperm.xlu1 %607, %v209_v31   ;;  %v290_v23 = vperm.slane %v286_v17, 2 }
  0x18   :  { %608 = vset.pattern.permute.xlu0 %v688_v50 }
  0x19   :  { %213 = vperm.xlu0 %608, %v208_v21  }
  0x1a   :  { %142 = vmatpush.bf16.msra.mxu0 %v536_v32  ;;  %156 = vmatpush.bf16.msra.mxu1 %v540_v33 }
  0x1e   :  { %143 = vmatpush.bf16.msra.mxu0 %v528_v38  ;;  %157 = vmatpush.bf16.msra.mxu1 %v532_v39 }
  0x1f   :  { %609 = vset.pattern.permute.xlu1 %v688_v50 }
  0x20   :  { %218 = vperm.xlu1 %609, %v209_v31  }
  0x21   :  { %610 = vset.pattern.permute.xlu0 %v687_v24 }
  0x22   :  { %144 = vmatpush.bf16.msra.mxu0 %v520_v44  ;;  %158 = vmatpush.bf16.msra.mxu1 %v524_v45 }
  0x26   :  { %145 = vmatpush.bf16.msra.mxu0 %v512_v51  ;;  %159 = vmatpush.bf16.msra.mxu1 %v516_v52 }
  0x29   :  { %146 = vmatmul.bf16.vlgmr.msra.gmra.mxu0 %v579_v53  ;;  %160 = vmatmul.bf16.vlgmr.msra.gmra.mxu1 %v579_v53 }
  0x7a   :  { %v262_v54 = vpop.permute.xlu0 %261 }
  0x7b   :  { %v274_v27 = vmul.f32 %v272_v22, %v262_v54  ;;  %v308_v29 = vmul.f32 %v290_v23, %v262_v54 }
  0x81   :  { %v280_v55 = vpop.permute.xlu1 %279 }
  0x82   :  { %v728_v57 = vpop.permute.xlu0 %265  ;;  %v292_v30 = vmul.f32 %v290_v23, %v280_v55  ;;  %v304_v31 = vmul.f32 %v280_v55, %v272_v22 }
  0x83   :  { %v276_v42 = vmul.f32 %v272_v22, %v728_v57  ;;  %v310_v46 = vmul.f32 %v290_v23, %v728_v57 }
  0x84   :  { %v296_v34 = vadd.f32 %v292_v30, %v274_v27  ;;  %v312_v35 = vsub.f32 %v304_v31, %v308_v29 }
  0x86   :  { %v300_v40 = vsub.f32 0.0, %v296_v34  ;;  %v316_v41 = vand.u32 2147483647, %v312_v35 }
  0x89   :  { %v733_v60 = vpop.permute.xlu1 %283 }
  0x8a   :  { %v294_v43 = vmul.f32 %v290_v23, %v733_v60  ;;  %v306_v48 = vmul.f32 %v733_v60, %v272_v22 }
  0x8b   :  { %v214_v2 = vpop.permute.xlu0 %213 }
  0x8c   :  { %vm228_vm5 = vcmp.eq.f32.partialorder %v214_v2, %v226_v0  ;;  %v298_v52 = vadd.f32 %v294_v43, %v276_v42  ;;  %v314_v56 = vsub.f32 %v306_v48, %v310_v46 }
  0x8d   :  { %vm232_vm7 = vmand %vm228_vm5, %vm736_vm3  ;;  %vm472_vm5 = vcmask 7168  }
  0x8e   :  { %v747_v6 = vsel %vm232_vm7, 1.0, %v689_v5  ;;  %v302_v61 = vsub.f32 0.0, %v298_v52  ;;  %v318_v60 = vand.u32 2147483647, %v314_v56 }
  0x92   :  { %v219_v4 = vpop.permute.xlu1 %218 }
  0x93   :  { %vm230_vm6 = vcmp.eq.f32.partialorder %v219_v4, %v226_v0 }
  0x94   :  { %vm234_vm8 = vmand %vm230_vm6, %vm741_vm4 }
  0x95   :  { %v578_v7 = vsel %vm234_vm8, 1.0, %v689_v5 }
  0x96   :  { %258 = vadd.xlane.f32.xlu1 %v578_v7 }
  0xa6   :  { %v147_v8 = vpop.f32.mrf.mxu0  ;;  %v161_v29 = vpop.f32.mrf.mxu1 }
  0xa7   :  { %v573_v9 = vclamps-f32 %v147_v8, 1.0  ;;  %v574_v30 = vclamps-f32 %v161_v29, 1.0 }
  0xa9   :  { %v320_v10 = vmul.f32 %v573_v9, %v573_v9  ;;  %v752_v11 = vmul.f32 %v747_v6, %v573_v9  ;;  %v755_v12 = vsel %vm184_vm0, %v573_v9, -1e+09  ;;  %v380_v53 = vmul.f32 %v573_v9, %v300_v40 }
  0xaa   :  { %v202_v27 = vmax.f32 %v755_v12, -1e+09 }
  0xab   :  { %v324_v13 = vsub.f32 1.0, %v320_v10 }
  0xad   :  { %v328_v14 = vadd.f32 1e-05, %v324_v13 }
  0xae   :  { %v149_v16 = vpop.f32.mrf.mxu0 }
  0xaf   :  { %v575_v18 = vclamps-f32 %v149_v16, 1.0  ;;  %611 = vrsqrt.f32 %v328_v14  ;;  %vm339_vm9 = vcmp.eq.f32.partialorder %v328_v14, inf  ;;  %v342_v47 = vand.u32 2147483648, %v328_v14 }
  0xb0   :  { %vm341_vm10 = vcmp.eq.f32.partialorder %v328_v14, 0.0 }
  0xb1   :  { %v322_v19 = vmul.f32 %v575_v18, %v575_v18  ;;  %v757_v20 = vmul.f32 %v578_v7, %v575_v18  ;;  %v760_v21 = vsel %vm184_vm0, %v575_v18, -1e+09  ;;  %v382_v5 = vmul.f32 %v575_v18, %v302_v61 }
  0xb2   :  { %v205_v31 = vmax.f32 %v760_v21, -1e+09 }
  0xb3   :  { %v326_v24 = vsub.f32 1.0, %v322_v19 }
  0xb5   :  { %v612_v25 = vpop.eup %611  ;;  %v330_v26 = vadd.f32 1e-05, %v326_v24 }
  0xb6   :  { %v333_v28 = vmul.f32 %v612_v25, %v328_v14 }
  0xb7   :  { %613 = vrsqrt.f32 %v330_v26  ;;  %vm363_vm11 = vcmp.eq.f32.partialorder %v330_v26, inf  ;;  %v366_v0 = vand.u32 2147483648, %v330_v26  ;;  %vm365_vm12 = vcmp.eq.f32.partialorder %v330_v26, 0.0 }
  0xb8   :  { %v334_v32 = vmul.f32 %v612_v25, %v333_v28 }
  0xba   :  { %v335_v33 = vmul.f32 0.5, %v334_v32  ;;  %v245_v32 = vmul.f32 0.0, %v574_v30 }
  0xbc   :  { %v336_v36 = vsub.f32 1.5, %v335_v33  ;;  %v163_v33 = vpop.f32.mrf.mxu1  ;;  %v248_v35 = vadd.f32 %v245_v32, %v752_v11 }
  0xbd   :  { %v614_v37 = vpop.eup %613  ;;  %v576_v34 = vclamps-f32 %v163_v33, 1.0 }
  0xbe   :  { %v337_v38 = vmul.f32 %v612_v25, %v336_v36  ;;  %v357_v39 = vmul.f32 %v614_v37, %v330_v26 }
  0xbf   :  { %v247_v36 = vmul.f32 0.0, %v576_v34 }
  0xc0   :  { %v338_v44 = vmul.f32 %v337_v38, %v328_v14  ;;  %v358_v45 = vmul.f32 %v614_v37, %v357_v39 }
  0xc2   :  { %v340_v49 = vsel %vm339_vm9, %v328_v14, %v338_v44  ;;  %v359_v50 = vmul.f32 0.5, %v358_v45 }
  0xc3   :  { %v343_v51 = vsel %vm341_vm10, %v342_v47, %v340_v49 }
  0xc4   :  { %v384_v54 = vmul.f32 %v343_v51, %v316_v41  ;;  %v360_v55 = vsub.f32 1.5, %v359_v50 }
  0xc6   :  { %v388_v58 = vsub.f32 %v380_v53, %v384_v54  ;;  %v361_v59 = vmul.f32 %v614_v37, %v360_v55  ;;  %v251_v37 = vadd.f32 %v247_v36, %v757_v20 }
  0xc8   :  { %v392_v62 = vsel %vm736_vm3, %v388_v58, -1e+09  ;;  %v362_v57 = vmul.f32 %v361_v59, %v330_v26 }
  0xc9   :  { %v396_v63 = vmax.f32 %v392_v62, -1e+09 }
  0xca   :  { %v364_v2 = vsel %vm363_vm11, %v330_v26, %v362_v57 }
  0xcb   :  { %397 = vmax.xlane.f32.xlu2 %v396_v63  ;;  %v367_v4 = vsel %vm365_vm12, %v366_v0, %v364_v2 }
  0xcc   :  { %v386_v7 = vmul.f32 %v367_v4, %v318_v60 }
  0xce   :  { %v390_v8 = vsub.f32 %v382_v5, %v386_v7 }
  0xd0   :  { %v394_v9 = vsel %vm741_vm4, %v390_v8, -1e+09 }
  0xd1   :  { %v399_v10 = vmax.f32 %v394_v9, -1e+09 }
  0xd3   :  { %400 = vmax.xlane.f32.xlu2 %v399_v10 }
  0xdb   :  { %255 = vadd.xlane.f32.xlu2 %v747_v6 }
 0x109   :  { %v259_v40 = vpop.xlane.xlu1 %258 }
 0x10a   :  { %v435_v41 = vadd.f32 1e-05, %v259_v40 }
 0x10c   :  { %vm456_vm0 = vweird.f32 %v435_v41  ;;  %v462_v5 = vand.u32 2147483648, %v435_v41 }
 0x13e   :  { %v398_v1 = vpop.xlane.xlu2 %397 }
 0x13f   :  { %v402_v13 = vsub.f32 %v392_v62, %v398_v1  ;;  %v403_v14 = vsub.f32 -1e+09, %v398_v1 }
 0x141   :  { %v406_v15 = vmul.f32 1.442695, %v402_v13  ;;  %v408_v16 = vmul.f32 1.442695, %v403_v14  ;;  %v463_v13 = vor.u32 1.1754944e-38, %v462_v5 }
 0x143   :  { %615 = vpow2.f32 %v406_v15 }
 0x144   :  { %617 = vpow2.f32 %v408_v16 }
 0x146   :  { %v401_v17 = vpop.xlane.xlu2 %400 }
 0x147   :  { %v404_v19 = vsub.f32 %v394_v9, %v401_v17  ;;  %v405_v22 = vsub.f32 -1e+09, %v401_v17  ;;  %v460_v9 = vand.u32 2147483647, %v435_v41 }
 0x149   :  { %v616_v18 = vpop.eup %615  ;;  %v410_v23 = vmul.f32 1.442695, %v404_v19  ;;  %v412_v24 = vmul.f32 1.442695, %v405_v22  ;;  %vm461_vm4 = vcmp.eq.f32.partialorder %v460_v9, 8.507059e+37 }
 0x14a   :  { %v618_v25 = vpop.eup %617 }
 0x14b   :  { %619 = vpow2.f32 %v410_v23  ;;  %v414_v3 = vadd.f32 %v618_v25, %v616_v18 }
 0x14c   :  { %621 = vpow2.f32 %v412_v24 }
 0x14d   :  { %415 = vadd.xlane.f32.xlu2 %v414_v3 }
 0x14e   :  { %v256_v38 = vpop.xlane.xlu2 %255 }
 0x14f   :  { %v434_v12 = vadd.f32 1e-05, %v256_v38 }
 0x151   :  { %v620_v26 = vpop.eup %619  ;;  %vm441_vm13 = vweird.f32 %v434_v12  ;;  %v447_v59 = vand.u32 2147483648, %v434_v12  ;;  %v445_v57 = vand.u32 2147483647, %v434_v12 }
 0x152   :  { %v622_v6 = vpop.eup %621 }
 0x153   :  { %v417_v28 = vadd.f32 %v622_v6, %v620_v26  ;;  %v448_v4 = vor.u32 1.1754944e-38, %v447_v59  ;;  %vm446_vm2 = vcmp.eq.f32.partialorder %v445_v57, 8.507059e+37 }
 0x155   :  { %203 = vmax.xlane.f32.xlu2 %v202_v27  ;;  %418 = vadd.xlane.f32.xlu0 %v417_v28 }
 0x15d   :  { %206 = vmax.xlane.f32.xlu2 %v205_v31 }
 0x165   :  { %249 = vadd.xlane.f32.xlu2 %v248_v35 }
 0x16d   :  { %252 = vadd.xlane.f32.xlu2 %v251_v37 }
 0x1c0   :  { %v416_v39 = vpop.xlane.xlu2 %415 }
 0x1c1   :  { %623 = vlog2.f32 %v416_v39 }
 0x1c2   :  { %625 = vrcp.f32 %v434_v12 }
 0x1c3   :  { %627 = vrcp.f32 %v435_v41 }
 0x1c7   :  { %v624_v42 = vpop.eup %623 }
 0x1c8   :  { %v419_v21 = vpop.xlane.xlu0 %418  ;;  %v204_v43 = vpop.xlane.xlu2 %203  ;;  %v421_v45 = vmul.f32 0.6931472, %v624_v42 }
 0x1c9   :  { %v626_v44 = vpop.eup %625  ;;  %629 = vlog2.f32 %v419_v21 }
 0x1ca   :  { %v437_v11 = vmul.f32 %v626_v44, %v434_v12  ;;  %v628_v46 = vpop.eup %627  ;;  %v424_v47 = vadd.f32 %v421_v45, %v398_v1  ;;  %vm442_vm14 = vweird.f32 %v626_v44 }
 0x1cb   :  { %v452_v50 = vmul.f32 %v628_v46, %v435_v41  ;;  %vm775_vm15 = vmor %vm441_vm13, %vm442_vm14  ;;  %vm457_vm1 = vweird.f32 %v628_v46 }
 0x1cc   :  { %v438_v49 = vsub.f32 1.0, %v437_v11  ;;  %v426_v52 = vadd.f32 %v424_v47, %v204_v43  ;;  %vm458_vm3 = vmor %vm456_vm0, %vm457_vm1 }
 0x1cd   :  { %v453_v54 = vsub.f32 1.0, %v452_v50 }
 0x1ce   :  { %v439_v53 = vmul.f32 %v626_v44, %v438_v49  ;;  %v428_v56 = vmul.f32 %v426_v52, %v256_v38 }
 0x1cf   :  { %v630_v48 = vpop.eup %629  ;;  %v454_v0 = vmul.f32 %v628_v46, %v453_v54 }
 0x1d0   :  { %v207_v20 = vpop.xlane.xlu2 %206  ;;  %v423_v51 = vmul.f32 0.6931472, %v630_v48  ;;  %v440_v58 = vadd.f32 %v626_v44, %v439_v53 }
 0x1d1   :  { %v455_v8 = vadd.f32 %v628_v46, %v454_v0 }
 0x1d2   :  { %v425_v55 = vadd.f32 %v423_v51, %v401_v17  ;;  %v444_v2 = vsel %vm775_vm15, %v626_v44, %v440_v58 }
 0x1d3   :  { %v449_v1 = vsel %vm446_vm2, %v448_v4, %v444_v2  ;;  %v459_v16 = vsel %vm458_vm3, %v628_v46, %v455_v8 }
 0x1d4   :  { %v427_v60 = vadd.f32 %v425_v55, %v207_v20  ;;  %v464_v22 = vsel %vm461_vm4, %v463_v13, %v459_v16 }
 0x1d6   :  { %v429_v10 = vmul.f32 %v427_v60, %v259_v40 }
 0x1d8   :  { %v250_v61 = vpop.xlane.xlu2 %249 }
 0x1d9   :  { %v430_v63 = vsub.f32 %v250_v61, %v428_v56 }
 0x1db   :  { %v432_v7 = vadd.f32 1e-05, %v430_v63 }
 0x1dd   :  { %v450_v15 = vmul.f32 %v449_v1, %v432_v7 }
 0x1df   :  { %v468_v18 = vmul.f32 -1.0, %v450_v15 }
 0x1e0   :  { %v253_v14 = vpop.xlane.xlu2 %252 }
 0x1e1   :  { %v431_v17 = vsub.f32 %v253_v14, %v429_v10  ;;  %v473_v25 = vsel %vm472_vm5, %v468_v18, 0.0 }
 0x1e3   :  { %v433_v19 = vadd.f32 1e-05, %v431_v17 }
 0x1e5   :  { %v465_v23 = vmul.f32 %v464_v22, %v433_v19 }
 0x1e7   :  { %v469_v24 = vmul.f32 -1.0, %v465_v23 }
 0x1e9   :  { %v474_v3 = vsel %vm472_vm5, %v469_v24, 0.0 }
 0x1ea   :  { %v475_v26 = vadd.f32 %v474_v3, %v473_v25 }
 0x1ec   :  { %476 = vadd.xlane.f32.xlu2 %v475_v26 }
 0x25f   :  { %v477_v6 = vpop.xlane.xlu2 %476 }
 0x260   :  { %v478_v27 = vrot.slane %v477_v6, 4 }
 0x262   :  { %v479_v28 = vadd.f32 %v478_v27, %v477_v6 }
 0x264   :  { %v480_v29 = vrot.slane %v479_v28, 2 }
 0x266   :  { %v481_v30 = vadd.f32 %v480_v29, %v479_v28 }
 0x268   :  { %v482_v31 = vrot.slane %v481_v30, 1 }
 0x26a   :  { %v483_v32 = vadd.f32 %v482_v31, %v481_v30 }
 0x26c   :  { %596 = vpush %v483_v32 }
 0x29d   :  { %s597_s5 = spop %596 }
 0x29e   :  { %v485_v33 = vstv %s597_s5 }
 0x29f   :  { %487 = vst [vmem:[#allocation5] sm:$0xff] %v485_v33 }
 0x2a0   :  { %498 = dma.vmem_to_hbm [thread:$0]  %s494_s3, 128, %s496_s30, [#allocation4]  }
 0x2a1   :  { %681 = dma.done.wait [#allocation4], 128  }
 0x2a2   :  { %682 = vsyncadd [#allocation4], 4294967168 }
 0x2a3   :  { %503 = vsyncpa [#allocation3], 1 }
 0x2a4   :  { %504 = vsyncpa [#allocation4], 1 }

</bundles_post_ra>
